<compile_context>
chip_gen: v6e
topology: v6e:2x2x1
jax: 0.10.0
libtpu: 0.0.40
codegen_flags: <defaults>
</compile_context>

<pallas_src>
import jax
import jax.numpy as jnp
from jax.experimental import pallas as pl
from jax.experimental.pallas import tpu as pltpu


def _round_up(n, m):
    return ((n + m - 1) // m) * m


def _predictor_kernel(a_ref, w_ref, b_ref, o_ref):
    # One fused GEMM over the K-concatenated activations, f32 accumulate on the
    # MXU, f32 bias-add epilogue (v5e-safe), then store in the output dtype.
    acc = jnp.dot(a_ref[...], w_ref[...], preferred_element_type=jnp.float32)
    o_ref[...] = (acc + b_ref[...]).astype(o_ref.dtype)


def prepare_params(params, compute_dtype=jnp.bfloat16):
    """One-time parameter prep (hoisted out of the per-call hot path).

    params: {"fc": (wx, bx), "latent_fc": (wl, bl), "ptp_fc": (wp, bp)}
    with weights stored as (in_features, out_features).
    Returns {"w_cat": (d_x+latent+ptp, 5) in compute_dtype,
             "bias":  (1, 5) in f32 (bx+bl+bp folded)}.
    """
    wx, bx = params["fc"]
    wl, bl = params["latent_fc"]
    wp, bp = params["ptp_fc"]
    w_cat = jnp.concatenate([wx, wl, wp], axis=0).astype(compute_dtype)
    bias = (
        bx.astype(jnp.float32) + bl.astype(jnp.float32) + bp.astype(jnp.float32)
    ).reshape(1, -1)
    return {"w_cat": w_cat, "bias": bias}


# Max batch rows per grid tile.  In bf16 this is ~2048*K*2 bytes per buffer
# (K ~ tens..hundreds), comfortably inside v7x's 32 MiB scoped VMEM even with
# double buffering.
_TB_MAX = 2048


def dummy_hidden_predictor(x, ptp, latent, prepared):
    """x: (B, num_conditional_frames, 5) or already-flat (B, ncf*5);
    ptp: (B, ptp_size); latent: (B, latent_size);
    prepared: output of prepare_params()."""
    w_cat = prepared["w_cat"]
    bias = prepared["bias"]
    cdt = w_cat.dtype

    B = x.shape[0]
    # Per-call glue: flatten x and build the K-concatenated activation matrix.
    a = jnp.concatenate(
        [x.reshape(B, -1).astype(cdt), latent.astype(cdt), ptp.astype(cdt)],
        axis=1,
    )
    K = a.shape[1]
    N = w_cat.shape[1]
    assert K == w_cat.shape[0], (K, w_cat.shape)

    # Batch tiling: single tile (padded to a sublane multiple) for small B,
    # fixed _TB_MAX-row tiles for large B.
    if B <= _TB_MAX:
        tb = _round_up(max(B, 1), 8)
        b_pad = tb
    else:
        tb = _TB_MAX
        b_pad = _round_up(B, tb)
    if b_pad != B:
        a = jnp.pad(a, ((0, b_pad - B), (0, 0)))

    out = pl.pallas_call(
        _predictor_kernel,
        out_shape=jax.ShapeDtypeStruct((b_pad, N), jnp.float32),
        grid=(b_pad // tb,),
        in_specs=[
            pl.BlockSpec((tb, K), lambda i: (i, 0)),   # activations: tiled over B
            pl.BlockSpec((K, N), lambda i: (0, 0)),    # fused weights: resident
            pl.BlockSpec((1, N), lambda i: (0, 0)),    # folded bias: resident
        ],
        out_specs=pl.BlockSpec((tb, N), lambda i: (i, 0)),
        compiler_params=pltpu.CompilerParams(
            dimension_semantics=("parallel",),         # shard B across TCs on v7x
            vmem_limit_bytes=32 * 1024 * 1024,         # sized for v7x's tighter VMEM
        ),
    )(a, w_cat, bias)

    return out[:B]


def init_params(key, num_conditional_frames, latent_size, ptp_size):
    """Deterministic synthetic parameters. Linear weights stored as (in, out)."""
    k = jax.random.split(key, 6)
    d_x = num_conditional_frames * 5
    params = {
        "fc": (
            jax.random.normal(k[0], (d_x, 5), jnp.float32) * 0.05,
            jax.random.normal(k[1], (5,), jnp.float32) * 0.05,
        ),
        "latent_fc": (
            jax.random.normal(k[2], (latent_size, 5), jnp.float32) * 0.05,
            jax.random.normal(k[3], (5,), jnp.float32) * 0.05,
        ),
        "ptp_fc": (
            jax.random.normal(k[4], (ptp_size, 5), jnp.float32) * 0.05,
            jax.random.normal(k[5], (5,), jnp.float32) * 0.05,
        ),
    }
    return params


if __name__ == "__main__":
    # Small shapes consistent with the module's forward.
    B = 2
    num_conditional_frames = 4
    latent_size = 32
    ptp_size = 16

    key = jax.random.PRNGKey(0)
    kx, kp, kl, kparams = jax.random.split(key, 4)

    x = jax.random.normal(kx, (B, num_conditional_frames, 5), jnp.float32)
    ptp = jax.random.normal(kp, (B, ptp_size), jnp.float32)
    latent = jax.random.normal(kl, (B, latent_size), jnp.float32)

    params = init_params(kparams, num_conditional_frames, latent_size, ptp_size)
    prepared = prepare_params(params, compute_dtype=jnp.bfloat16)

    out = dummy_hidden_predictor(x, ptp, latent, prepared)
    out = jax.block_until_ready(out)

    # Pure-JAX references.
    wx, bx = params["fc"]
    wl, bl = params["latent_fc"]
    wp, bp = params["ptp_fc"]

    # (a) f32 reference of the original module (loose tolerance: kernel feeds bf16).
    ref_f32 = x.reshape(B, -1) @ wx + bx + latent @ wl + bl + ptp @ wp + bp

    # (b) precision-matched reference (bf16 inputs/weights, f32 accumulate).
    a_bf = jnp.concatenate(
        [
            x.reshape(B, -1).astype(jnp.bfloat16),
            latent.astype(jnp.bfloat16),
            ptp.astype(jnp.bfloat16),
        ],
        axis=1,
    ).astype(jnp.float32)
    w_bf = prepared["w_cat"].astype(jnp.float32)
    ref_bf = a_bf @ w_bf + prepared["bias"]

    assert out.shape == (B, 5)
    assert jnp.allclose(out, ref_bf, atol=1e-5, rtol=1e-5), "mismatch vs bf16-matched ref"
    assert jnp.allclose(out, ref_f32, atol=5e-2, rtol=5e-2), "mismatch vs f32 ref"

    print("KERNEL_OK")
</pallas_src>

<mosaic_0001>
module attributes {stable_mosaic.version = 11 : i64} {
  func.func @_predictor_kernel(%arg0: i32, %arg1: memref<8x68xbf16, #tpu.memory_space<vmem>>, %arg2: memref<68x5xbf16, #tpu.memory_space<vmem>>, %arg3: memref<1x5xf32, #tpu.memory_space<vmem>>, %arg4: memref<8x5xf32, #tpu.memory_space<vmem>>) attributes {dimension_semantics = [#tpu.dimension_semantics<parallel>], iteration_bounds = array<i64: 1>, scalar_prefetch = 0 : i64, scratch_operands = 0 : i64, tpu.core_type = #tpu.core_type<tc>, window_params = [{transform_indices = @transform_0, window_bounds = array<i64: 8, 68>}, {pipeline_mode = #tpu.pipeline_mode<synchronous>, transform_indices = @transform_1, window_bounds = array<i64: 68, 5>}, {pipeline_mode = #tpu.pipeline_mode<synchronous>, transform_indices = @transform_2, window_bounds = array<i64: 1, 5>}, {transform_indices = @transform_3, window_bounds = array<i64: 8, 5>}]} {
    %c0 = arith.constant 0 : index
    %c0_0 = arith.constant 0 : index
    %0 = vector.load %arg1[%c0, %c0_0] : memref<8x68xbf16, #tpu.memory_space<vmem>>, vector<8x68xbf16>
    %c0_1 = arith.constant 0 : index
    %c0_2 = arith.constant 0 : index
    %1 = vector.load %arg2[%c0_1, %c0_2] : memref<68x5xbf16, #tpu.memory_space<vmem>>, vector<68x5xbf16>
    %cst = arith.constant dense<0.000000e+00> : vector<8x5xf32>
    %2 = tpu.matmul %0, %1, %cst {dimension_numbers = #tpu.dot_dimension_numbers<[1], [0], [0], [1], [0, 0, 1, 1], [], []>} : vector<8x68xbf16>, vector<68x5xbf16>, vector<8x5xf32> -> vector<8x5xf32>
    %c0_3 = arith.constant 0 : index
    %c0_4 = arith.constant 0 : index
    %3 = vector.load %arg3[%c0_3, %c0_4] : memref<1x5xf32, #tpu.memory_space<vmem>>, vector<1x5xf32>
    %4 = vector.broadcast %3 : vector<1x5xf32> to vector<8x5xf32>
    %5 = arith.addf %2, %4 : vector<8x5xf32>
    %c0_5 = arith.constant 0 : index
    %c0_6 = arith.constant 0 : index
    %6 = vector.load %arg4[%c0_5, %c0_6] : memref<8x5xf32, #tpu.memory_space<vmem>>, vector<8x5xf32>
    tpu.vector_store %arg4[%c0_5, %c0_6], %5 {strides = array<i32>} : memref<8x5xf32, #tpu.memory_space<vmem>>, vector<8x5xf32>,
    return
  }
  func.func @transform_0(%arg0: i32) -> (i32, i32) {
    %c0_i32 = arith.constant 0 : i32
    %c0_i32_0 = arith.constant 0 : i32
    return %arg0, %c0_i32 : i32, i32
  }
  func.func @transform_1(%arg0: i32) -> (i32, i32) {
    %c0_i32 = arith.constant 0 : i32
    %c0_i32_0 = arith.constant 0 : i32
    %c0_i32_1 = arith.constant 0 : i32
    return %c0_i32, %c0_i32_0 : i32, i32
  }
  func.func @transform_2(%arg0: i32) -> (i32, i32) {
    %c0_i32 = arith.constant 0 : i32
    %c0_i32_0 = arith.constant 0 : i32
    %c0_i32_1 = arith.constant 0 : i32
    return %c0_i32, %c0_i32_0 : i32, i32
  }
  func.func @transform_3(%arg0: i32) -> (i32, i32) {
    %c0_i32 = arith.constant 0 : i32
    %c0_i32_0 = arith.constant 0 : i32
    return %arg0, %c0_i32 : i32, i32
  }
}

</mosaic_0001>

<bundles_post_ra>
// kernel: tpu_custom_call.1
= control target key start
LH: loop header
LB: loop body
LE: loop exit
PB: predicated region body
PF: predicated region fallthrough
CT: control target
= control target key end

     0   :  { %v181_v1 = vmov 0.0   ;;  %vm64_vm0 = vcmask 1041408   ;;  %vm182_vm1 = vmmov 0   ;;  %s228_s0 = inlined_call_operand.vmem [shape: bf16[8,68], index: 0, kind: input, shape index: {}]   ;;  %s229_s1 = inlined_call_operand.vmem [shape: bf16[68,5], index: 1, kind: input, shape index: {}]   ;;  %s230_s2 = inlined_call_operand.vmem [shape: f32[1,5], index: 2, kind: input, shape index: {}]   ;;  %s231_s3 = inlined_call_operand.hbm [shape: f32[8,5], index: 3, kind: output, shape index: {}]  }
   0x1   :  { %v154_v0 = vld [vmem:[%s229_s1 + $0x20] ss:$0 sps:$4 sm:$0x33]   ;;  %137 = vmatprep.subr.bf16.mxu0 %v181_v1  ;;  %v155_v3 = vld [vmem:[%s229_s1 + $0x18] sm:$0xff]   ;;  %147 = vmatprep.mubr.msk.bf16.mxu0 %vm182_vm1, %v181_v1 }
   0x2   :  { %v66_v2 = vsel %vm64_vm0, %v154_v0, 0 }
   0x3   :  { %138 = vmatpush3.bf16.msra.mxu0 %v66_v2 }
   0x4   :  { %139 = vmatprep.subr.bf16.mxu0 %v181_v1 }
   0x5   :  { %8 = vsyncpa [#allocation3], 0  ;;  %v156_v4 = vld [vmem:[%s229_s1 + $0x10] sm:$0xff]   ;;  %v157_v5 = vld [vmem:[%s229_s1 + $0x8] sm:$0xff]   ;;  %vm60_vm2 = vcmask 556032   ;;  %s183_s26 = smov [#allocation2]  }
   0x6   :  { %v158_v6 = vld [vmem:[%s229_s1] sm:$0xff]   ;;  %s116_s27 = sshll.u32 %s183_s26, 4  ;;  %vm108_vm3 = vcmask 39936   ;;  %s117_s27 = int_to_ptr.vmem [resolvable:$true] %s116_s27 }
   0x7   :  { %140 = vmatpush3.bf16.msra.mxu0 %v155_v3  ;;  %v16_v7 = vld [vmem:[%s228_s0] sm:$0xf]  ;;  %s159_s1 = scalar_lea.vmem %s117_s27, 128  ;;  %p164_p1 = scmp.lt.s32.totalorder %s117_s27, %s117_s27 }
   0x8   :  { %141 = vmatprep.subr.bf16.mxu0 %v181_v1  ;;  %v124_v8 = vld [vmem:[%s230_s2] ss:$0 sm:$0xff]  ;;  %p160_p0 = scmp.ne.s32.totalorder %s117_s27, %s159_s1  ;;  %p165_p2 = scmp.lt.s32.totalorder %s159_s1, %s159_s1 }
   0xa   :  { %p166_p3 = por %p165_p2, %p164_p1 }
   0xb   :  { %142 = vmatpush3.bf16.msra.mxu0 %v156_v4 }
   0xc   :  { %143 = vmatprep.subr.bf16.mxu0 %v181_v1  ;;  %p167_p4 = pnand %p166_p3, %p160_p0 }
   0xf   :  { %144 = vmatpush3.bf16.msra.mxu0 %v157_v5 }
  0x10   :  { %145 = vmatprep.subr.bf16.mxu0 %v181_v1 }
  0x13   :  { %146 = vmatpush3.bf16.msra.mxu0 %v158_v6 }
  0x16   :  { %148 = vmatmul.mubr.msk.bf16.vlgmr.msra.gmra.mxu0 %vm60_vm2, %v16_v7 }
  0xd6   :  { %v102_v9 = vpop.f32.mrf.mxu0 }
  0xd7   :  { %v103_v10 = vadd.f32 %v124_v8, %v102_v9 }
  0xd8   :  { %v149_v11 = vpop.f32.mrf.mxu0 }
  0xd9   :  { %109 = vst.msk [vmem:[#allocation2] sm:$0xff] %vm108_vm3, %v103_v10 }
  0xda   :  { %v105_v12 = vpop.f32.mrf.mxu0 }
  0xdb   :  { %170 = shalt.err (!%p167_p4)
}
  0xdc   :  { %119 = dma.vmem_to_hbm [thread:$0]  %s117_s27, 128, %s231_s3, [#allocation3]   ;;  %v150_v13 = vpop.f32.mrf.mxu0 }
  0xdd   :  { %179 = dma.done.wait [#allocation3], 128  }
  0xde   :  { %180 = vsyncadd [#allocation3], 4294967168 }
  0xdf   :  { %123 = vsyncpa [#allocation3], 1 }

</bundles_post_ra>
